<compile_context>
chip_gen: v7x
topology: tpu7x:2x2x1
jax: 0.10.0
libtpu: 0.0.40
codegen_flags: <defaults>
</compile_context>

<pallas_src>
import functools

import jax
import jax.numpy as jnp
from jax.experimental import pallas as pl
from jax.experimental.pallas import tpu as pltpu


def _round_up(v, m):
    return ((v + m - 1) // m) * m


def _mlp_kernel(x_ref, w1_ref, b1_ref, w2_ref, b2_ref, w3_ref, b3_ref, o_ref):
    # One batch tile [TM, D_in] (f32); weights/biases are whole-array resident.
    # Cast activations to bf16 in-kernel (VPU slack) right before the MXU.
    x = x_ref[...].astype(jnp.bfloat16)                               # bf16 [TM, D_in]

    # Layer 1: bf16 MXU inputs, f32 accumulate, f32 bias-add + ReLU (VPU).
    h1 = jnp.dot(x, w1_ref[...], preferred_element_type=jnp.float32)
    h1 = jnp.maximum(h1 + b1_ref[...], 0.0)                           # f32 [TM, H]

    # Layer 2.
    h2 = jnp.dot(h1.astype(jnp.bfloat16), w2_ref[...],
                 preferred_element_type=jnp.float32)
    h2 = jnp.maximum(h2 + b2_ref[...], 0.0)                           # f32 [TM, H]

    # Layer 3 (classifier, lane-padded to a multiple of 128 -> dense vst).
    out = jnp.dot(h2.astype(jnp.bfloat16), w3_ref[...],
                  preferred_element_type=jnp.float32)
    o_ref[...] = (out + b3_ref[...]).astype(o_ref.dtype)              # f32 [TM, C_pad]


def prepare_params(params):
    """One-time parameter prep (do NOT call per forward):
    weights -> bf16, biases -> f32 row vectors, classifier lane-padded to a
    multiple of 128. Returns (prepared_params, num_classes)."""
    w1, b1, w2, b2, w3, b3 = params
    hidden = w1.shape[1]
    num_classes = w3.shape[1]
    c_pad = max(128, _round_up(num_classes, 128))

    w3p = jnp.zeros((hidden, c_pad), jnp.bfloat16).at[:, :num_classes].set(
        w3.astype(jnp.bfloat16))
    b3p = jnp.zeros((1, c_pad), jnp.float32).at[:, :num_classes].set(
        b3.reshape(1, -1).astype(jnp.float32))

    prepared = (
        w1.astype(jnp.bfloat16), b1.reshape(1, -1).astype(jnp.float32),
        w2.astype(jnp.bfloat16), b2.reshape(1, -1).astype(jnp.float32),
        w3p, b3p,
    )
    return prepared, num_classes


@functools.partial(jax.jit, static_argnames=("num_classes", "block_m"))
def nn_forward(x_nchw, prepared, num_classes, *, block_m=2048):
    """Forward pass of the NN module. x_nchw: [B, C, H, W] float32.
    `prepared` comes from prepare_params()."""
    w1, b1, w2, b2, w3p, b3p = prepared
    B = x_nchw.shape[0]

    # nn.Flatten(): [B, C*H*W] (glue, plain JAX; stays f32).
    x2d = x_nchw.reshape(B, -1)
    d_in = x2d.shape[1]
    hidden = w1.shape[1]
    c_pad = w3p.shape[1]

    # Batch tile:
    #  * small B: exact/8-aligned tile, single grid step.
    #  * larger B: multiple of 16, capped at block_m, and sized so the batch
    #    grid has >=2 steps (lets the "parallel" axis shard across v7x's 2 TCs).
    # No wrapper-side row padding: Pallas masks the partial last block.
    if B <= 16:
        tm = _round_up(B, 8)
    else:
        tm = min(block_m, max(16, _round_up((B + 1) // 2, 16)))
    grid = (pl.cdiv(B, tm),)

    flops = 2 * B * (d_in * hidden + hidden * hidden + hidden * c_pad)
    bytes_accessed = (
        x2d.size * 4 + B * c_pad * 4                      # activation in/out (f32)
        + (w1.size + w2.size + w3p.size) * 2              # bf16 weights
        + (b1.size + b2.size + b3p.size) * 4               # f32 biases
    )

    # Weights/biases use a constant block index -> fetched once, VMEM-resident
    # across the whole (parallel) batch grid.
    const = lambda shape: pl.BlockSpec(shape, lambda i: (0,) * len(shape))

    out = pl.pallas_call(
        _mlp_kernel,
        out_shape=jax.ShapeDtypeStruct((B, c_pad), jnp.float32),
        grid=grid,
        in_specs=[
            pl.BlockSpec((tm, d_in), lambda i: (i, 0)),   # activation stream (f32)
            const((d_in, hidden)),                        # w1 (bf16)
            const((1, hidden)),                           # b1 (f32)
            const((hidden, hidden)),                      # w2 (bf16)
            const((1, hidden)),                           # b2 (f32)
            const((hidden, c_pad)),                       # w3 (bf16, lane-padded)
            const((1, c_pad)),                            # b3 (f32, lane-padded)
        ],
        out_specs=pl.BlockSpec((tm, c_pad), lambda i: (i, 0)),
        compiler_params=pltpu.CompilerParams(
            # Batch axis is independent -> shard across TCs on v7x megacore.
            dimension_semantics=("parallel",),
            # Above the 16 MiB v5e scoped default; double-buffered f32 input
            # (2 x tm x d_in x 4B) + f32 output tiles + bf16 weights stay well
            # under this even at tm=2048 / MNIST d_in=784.
            vmem_limit_bytes=32 * 1024 * 1024,
        ),
        cost_estimate=pl.CostEstimate(
            flops=flops, transcendentals=0, bytes_accessed=bytes_accessed),
    )(x2d, w1, b1, w2, b2, w3p, b3p)

    # Only the cheap class slice remains outside (rows already exact).
    return out[:, :num_classes]


def init_params(key, input_size, hidden_layer_size, num_classes):
    """Deterministic init mimicking PyTorch nn.Linear default
    (uniform(-1/sqrt(fan_in), 1/sqrt(fan_in))). Weights stored as (in, out)."""
    def linear(key, fan_in, fan_out):
        kw, kb = jax.random.split(key)
        bound = 1.0 / jnp.sqrt(fan_in)
        w = jax.random.uniform(kw, (fan_in, fan_out), jnp.float32, -bound, bound)
        b = jax.random.uniform(kb, (1, fan_out), jnp.float32, -bound, bound)
        return w, b

    k1, k2, k3 = jax.random.split(key, 3)
    w1, b1 = linear(k1, input_size, hidden_layer_size)
    w2, b2 = linear(k2, hidden_layer_size, hidden_layer_size)
    w3, b3 = linear(k3, hidden_layer_size, num_classes)
    return (w1, b1, w2, b2, w3, b3)


if __name__ == "__main__":
    # Small MNIST-like shapes: batch=8, 1 channel, 16x16 image -> input_size=256
    B, C, H, W = 8, 1, 16, 16
    input_size = C * H * W          # 256
    hidden_layer_size = 128
    num_classes = 10

    key = jax.random.PRNGKey(0)
    kx, kp = jax.random.split(key)
    x = jax.random.normal(kx, (B, C, H, W), jnp.float32)
    params = init_params(kp, input_size, hidden_layer_size, num_classes)

    # One-time weight prep (bf16 + lane-padded classifier), outside the forward.
    prepared, n_cls = prepare_params(params)
    prepared = jax.tree_util.tree_map(jax.block_until_ready, prepared)

    logits = nn_forward(x, prepared, n_cls)
    jax.block_until_ready(logits)
    assert logits.shape == (B, num_classes)

    # Reference with the same bf16 quantization of MXU inputs and f32
    # accumulation / bias-add / ReLU (matches the kernel's numerics).
    w1, b1, w2, b2, w3, b3 = params
    q = lambda a: a.astype(jnp.bfloat16).astype(jnp.float32)
    x2d = x.reshape(B, -1)
    r = jnp.maximum(q(x2d) @ q(w1) + b1, 0.0)
    r = jnp.maximum(q(r) @ q(w2) + b2, 0.0)
    ref = q(r) @ q(w3) + b3
    assert jnp.allclose(logits, ref, atol=2e-2, rtol=2e-2), (
        float(jnp.max(jnp.abs(logits - ref))))

    # Sanity vs full-f32 reference (loose tolerance for bf16 MXU inputs).
    rf = jnp.maximum(x2d @ w1 + b1, 0.0)
    rf = jnp.maximum(rf @ w2 + b2, 0.0)
    ref_f32 = rf @ w3 + b3
    assert jnp.allclose(logits, ref_f32, atol=5e-2, rtol=5e-2)

    print("KERNEL_OK")
</pallas_src>

<mosaic_0001>
module attributes {stable_mosaic.version = 11 : i64} {
  func.func @_mlp_kernel(%arg0: i32, %arg1: memref<8x256xf32, #tpu.memory_space<vmem>>, %arg2: memref<256x128xbf16, #tpu.memory_space<vmem>>, %arg3: memref<1x128xf32, #tpu.memory_space<vmem>>, %arg4: memref<128x128xbf16, #tpu.memory_space<vmem>>, %arg5: memref<1x128xf32, #tpu.memory_space<vmem>>, %arg6: memref<128x128xbf16, #tpu.memory_space<vmem>>, %arg7: memref<1x128xf32, #tpu.memory_space<vmem>>, %arg8: memref<8x128xf32, #tpu.memory_space<vmem>>) attributes {dimension_semantics = [#tpu.dimension_semantics<parallel>], iteration_bounds = array<i64: 1>, scalar_prefetch = 0 : i64, scratch_operands = 0 : i64, tpu.core_type = #tpu.core_type<tc>, window_params = [{transform_indices = @transform_0, window_bounds = array<i64: 8, 256>}, {pipeline_mode = #tpu.pipeline_mode<synchronous>, transform_indices = @transform_1, window_bounds = array<i64: 256, 128>}, {pipeline_mode = #tpu.pipeline_mode<synchronous>, transform_indices = @transform_2, window_bounds = array<i64: 1, 128>}, {pipeline_mode = #tpu.pipeline_mode<synchronous>, transform_indices = @transform_3, window_bounds = array<i64: 128, 128>}, {pipeline_mode = #tpu.pipeline_mode<synchronous>, transform_indices = @transform_4, window_bounds = array<i64: 1, 128>}, {pipeline_mode = #tpu.pipeline_mode<synchronous>, transform_indices = @transform_5, window_bounds = array<i64: 128, 128>}, {pipeline_mode = #tpu.pipeline_mode<synchronous>, transform_indices = @transform_6, window_bounds = array<i64: 1, 128>}, {transform_indices = @transform_7, window_bounds = array<i64: 8, 128>}]} {
    %c0 = arith.constant 0 : index
    %c0_0 = arith.constant 0 : index
    %0 = vector.load %arg1[%c0, %c0_0] : memref<8x256xf32, #tpu.memory_space<vmem>>, vector<8x256xf32>
    %1 = arith.truncf %0 : vector<8x256xf32> to vector<8x256xbf16>
    %c0_1 = arith.constant 0 : index
    %c0_2 = arith.constant 0 : index
    %2 = vector.load %arg2[%c0_1, %c0_2] : memref<256x128xbf16, #tpu.memory_space<vmem>>, vector<256x128xbf16>
    %cst = arith.constant dense<0.000000e+00> : vector<8x128xf32>
    %3 = tpu.matmul %1, %2, %cst {dimension_numbers = #tpu.dot_dimension_numbers<[1], [0], [0], [1], [0, 0, 1, 1], [], []>} : vector<8x256xbf16>, vector<256x128xbf16>, vector<8x128xf32> -> vector<8x128xf32>
    %c0_3 = arith.constant 0 : index
    %c0_4 = arith.constant 0 : index
    %4 = vector.load %arg3[%c0_3, %c0_4] : memref<1x128xf32, #tpu.memory_space<vmem>>, vector<1x128xf32>
    %5 = vector.broadcast %4 : vector<1x128xf32> to vector<8x128xf32>
    %6 = arith.addf %3, %5 : vector<8x128xf32>
    %cst_5 = arith.constant 0.000000e+00 : f32
    %7 = vector.broadcast %cst_5 : f32 to vector<8x128xf32>
    %8 = arith.maximumf %6, %7 : vector<8x128xf32>
    %9 = arith.truncf %8 : vector<8x128xf32> to vector<8x128xbf16>
    %c0_6 = arith.constant 0 : index
    %c0_7 = arith.constant 0 : index
    %10 = vector.load %arg4[%c0_6, %c0_7] : memref<128x128xbf16, #tpu.memory_space<vmem>>, vector<128x128xbf16>
    %cst_8 = arith.constant dense<0.000000e+00> : vector<8x128xf32>
    %11 = tpu.matmul %9, %10, %cst_8 {dimension_numbers = #tpu.dot_dimension_numbers<[1], [0], [0], [1], [0, 0, 1, 1], [], []>} : vector<8x128xbf16>, vector<128x128xbf16>, vector<8x128xf32> -> vector<8x128xf32>
    %c0_9 = arith.constant 0 : index
    %c0_10 = arith.constant 0 : index
    %12 = vector.load %arg5[%c0_9, %c0_10] : memref<1x128xf32, #tpu.memory_space<vmem>>, vector<1x128xf32>
    %13 = vector.broadcast %12 : vector<1x128xf32> to vector<8x128xf32>
    %14 = arith.addf %11, %13 : vector<8x128xf32>
    %cst_11 = arith.constant 0.000000e+00 : f32
    %15 = vector.broadcast %cst_11 : f32 to vector<8x128xf32>
    %16 = arith.maximumf %14, %15 : vector<8x128xf32>
    %17 = arith.truncf %16 : vector<8x128xf32> to vector<8x128xbf16>
    %c0_12 = arith.constant 0 : index
    %c0_13 = arith.constant 0 : index
    %18 = vector.load %arg6[%c0_12, %c0_13] : memref<128x128xbf16, #tpu.memory_space<vmem>>, vector<128x128xbf16>
    %cst_14 = arith.constant dense<0.000000e+00> : vector<8x128xf32>
    %19 = tpu.matmul %17, %18, %cst_14 {dimension_numbers = #tpu.dot_dimension_numbers<[1], [0], [0], [1], [0, 0, 1, 1], [], []>} : vector<8x128xbf16>, vector<128x128xbf16>, vector<8x128xf32> -> vector<8x128xf32>
    %c0_15 = arith.constant 0 : index
    %c0_16 = arith.constant 0 : index
    %20 = vector.load %arg7[%c0_15, %c0_16] : memref<1x128xf32, #tpu.memory_space<vmem>>, vector<1x128xf32>
    %21 = vector.broadcast %20 : vector<1x128xf32> to vector<8x128xf32>
    %22 = arith.addf %19, %21 : vector<8x128xf32>
    %c0_17 = arith.constant 0 : index
    %c0_18 = arith.constant 0 : index
    %23 = vector.load %arg8[%c0_17, %c0_18] : memref<8x128xf32, #tpu.memory_space<vmem>>, vector<8x128xf32>
    tpu.vector_store %arg8[%c0_17, %c0_18], %22 {strides = array<i32>} : memref<8x128xf32, #tpu.memory_space<vmem>>, vector<8x128xf32>,
    return
  }
  func.func @transform_0(%arg0: i32) -> (i32, i32) {
    %c0_i32 = arith.constant 0 : i32
    %c0_i32_0 = arith.constant 0 : i32
    return %arg0, %c0_i32 : i32, i32
  }
  func.func @transform_1(%arg0: i32) -> (i32, i32) {
    %c0_i32 = arith.constant 0 : i32
    %c0_i32_0 = arith.constant 0 : i32
    %c0_i32_1 = arith.constant 0 : i32
    return %c0_i32, %c0_i32_0 : i32, i32
  }
  func.func @transform_2(%arg0: i32) -> (i32, i32) {
    %c0_i32 = arith.constant 0 : i32
    %c0_i32_0 = arith.constant 0 : i32
    %c0_i32_1 = arith.constant 0 : i32
    return %c0_i32, %c0_i32_0 : i32, i32
  }
  func.func @transform_3(%arg0: i32) -> (i32, i32) {
    %c0_i32 = arith.constant 0 : i32
    %c0_i32_0 = arith.constant 0 : i32
    %c0_i32_1 = arith.constant 0 : i32
    return %c0_i32, %c0_i32_0 : i32, i32
  }
  func.func @transform_4(%arg0: i32) -> (i32, i32) {
    %c0_i32 = arith.constant 0 : i32
    %c0_i32_0 = arith.constant 0 : i32
    %c0_i32_1 = arith.constant 0 : i32
    return %c0_i32, %c0_i32_0 : i32, i32
  }
  func.func @transform_5(%arg0: i32) -> (i32, i32) {
    %c0_i32 = arith.constant 0 : i32
    %c0_i32_0 = arith.constant 0 : i32
    %c0_i32_1 = arith.constant 0 : i32
    return %c0_i32, %c0_i32_0 : i32, i32
  }
  func.func @transform_6(%arg0: i32) -> (i32, i32) {
    %c0_i32 = arith.constant 0 : i32
    %c0_i32_0 = arith.constant 0 : i32
    %c0_i32_1 = arith.constant 0 : i32
    return %c0_i32, %c0_i32_0 : i32, i32
  }
  func.func @transform_7(%arg0: i32) -> (i32, i32) {
    %c0_i32 = arith.constant 0 : i32
    %c0_i32_0 = arith.constant 0 : i32
    return %arg0, %c0_i32 : i32, i32
  }
}

</mosaic_0001>

<bundles_post_ra>
// kernel: nn_forward.1
= control target key start
LH: loop header
LB: loop body
LE: loop exit
PB: predicated region body
PF: predicated region fallthrough
CT: control target
= control target key end

     0   :  { %12 = vsyncpa [#allocation3], 0  ;;  %s868_s0 = inlined_call_operand.vmem [shape: f32[8,256], index: 0, kind: input, shape index: {}]   ;;  %s869_s1 = inlined_call_operand.vmem [shape: bf16[256,128], index: 1, kind: input, shape index: {}]   ;;  %s870_s2 = inlined_call_operand.vmem [shape: f32[1,128], index: 2, kind: input, shape index: {}]   ;;  %s871_s3 = inlined_call_operand.hbm [shape: bf16[128,128], index: 3, kind: input, shape index: {}]   ;;  %s872_s4 = inlined_call_operand.vmem [shape: f32[1,128], index: 4, kind: input, shape index: {}]   ;;  %s873_s5 = inlined_call_operand.hbm [shape: bf16[128,128], index: 5, kind: input, shape index: {}]   ;;  %s874_s6 = inlined_call_operand.vmem [shape: f32[1,128], index: 6, kind: input, shape index: {}]   ;;  %s875_s7 = inlined_call_operand.hbm [shape: f32[8,128], index: 7, kind: output, shape index: {}]  }
   0x1   :  { %13 = vsyncpa [#allocation6], 0 }
   0x2   :  { %14 = vsyncpa [#allocation4], 0  ;;  %s704_s24 = smov [#allocation2]   ;;  %s632_s28 = scalar_lea.hbm %s871_s3, 1024 }
   0x3   :  { %s26_s25 = sshll.u32 %s704_s24, 4  ;;  %p633_p0 = scmp.ne.s32.totalorder %s871_s3, %s632_s28  ;;  %s27_s25 = int_to_ptr.vmem [resolvable:$true] %s26_s25 }
   0x4   :  { %p636_p1 = scmp.lt.u32.totalorder %s632_s28, %s871_s3 }
   0x6   :  { %p638_p2 = pnand %p636_p1, %p633_p0 }
   0x8   :  { %641 = shalt.err (!%p638_p2)
}
   0x9   :  { %s642_s10 = scalar_lea.vmem %s27_s25, 1024  ;;  %p647_p4 = scmp.lt.s32.totalorder %s27_s25, %s27_s25 }
   0xa   :  { %p643_p3 = scmp.ne.s32.totalorder %s27_s25, %s642_s10  ;;  %p648_p5 = scmp.lt.s32.totalorder %s642_s10, %s642_s10 }
   0xc   :  { %p649_p6 = por %p648_p5, %p647_p4 }
   0xe   :  { %p650_p7 = pnand %p649_p6, %p643_p3 }
  0x10   :  { %653 = shalt.err (!%p650_p7)
}
  0x11   :  { %s705_s11 = smov 64   ;;  %s706_s12 = smov 4  }
  0x12   :  { %32 = dma.hbm_to_vmem [thread:$0]  %s871_s3, 1024, %s27_s25, [#allocation3], %s705_s11, %s705_s11, %s706_s12  }
  0x13   :  { %s707_s15 = smov [#allocation5]   ;;  %s654_s19 = scalar_lea.hbm %s873_s5, 1024 }
  0x14   :  { %s40_s16 = sshll.u32 %s707_s15, 4  ;;  %p655_p8 = scmp.ne.s32.totalorder %s873_s5, %s654_s19  ;;  %s41_s16 = int_to_ptr.vmem [resolvable:$true] %s40_s16 }
  0x15   :  { %p658_p9 = scmp.lt.u32.totalorder %s654_s19, %s873_s5 }
  0x17   :  { %p660_p10 = pnand %p658_p9, %p655_p8 }
  0x19   :  { %663 = shalt.err (!%p660_p10)
}
  0x1a   :  { %s664_s24 = scalar_lea.vmem %s41_s16, 1024  ;;  %p669_p12 = scmp.lt.s32.totalorder %s41_s16, %s41_s16 }
  0x1b   :  { %p665_p11 = scmp.ne.s32.totalorder %s41_s16, %s664_s24  ;;  %p670_p13 = scmp.lt.s32.totalorder %s664_s24, %s664_s24 }
  0x1d   :  { %p671_p0 = por %p670_p13, %p669_p12 }
  0x1f   :  { %p672_p1 = pnand %p671_p0, %p665_p11 }
  0x21   :  { %675 = shalt.err (!%p672_p1)
}
  0x22   :  { %46 = dma.hbm_to_vmem [thread:$0]  %s873_s5, 1024, %s41_s16, [#allocation6], %s705_s11, %s705_s11, %s706_s12  }
  0x23   :  { %698 = dma.done.wait [#allocation3], 1024  }
  0x24   :  { %699 = vsyncadd [#allocation3], 4294966272 }
  0x25   :  { %700 = dma.done.wait [#allocation6], 1024  }
  0x26   :  { %701 = vsyncadd [#allocation6], 4294966272  ;;  %v708_v0 = vmov 0.0   ;;  %v600_v1 = vld [vmem:[%s869_s1 + $0x40] sm:$0xff]   ;;  %v602_v3 = vld [vmem:[%s869_s1 + $0x48] sm:$0xff]   ;;  %vm709_vm0 = vmmov 0  }
  0x27   :  { %553 = vmatprep.subr.bf16.mxu1 %v708_v0  ;;  %v601_v2 = vld [vmem:[%s869_s1] sm:$0xff]   ;;  %513 = vmatprep.subr.bf16.mxu0 %v600_v1  ;;  %v603_v4 = vld [vmem:[%s869_s1 + $0x8] sm:$0xff]   ;;  %v604_v5 = vld [vmem:[%s869_s1 + $0x50] sm:$0xff]   ;;  %s710_s16 = smov [#allocation7]  }
  0x28   :  { %514 = vmatpush3.bf16.msra.mxu0 %v601_v2  ;;  %v605_v6 = vld [vmem:[%s869_s1 + $0x10] sm:$0xff]   ;;  %v606_v7 = vld [vmem:[%s869_s1 + $0x58] sm:$0xff]   ;;  %v608_v9 = vld [vmem:[%s869_s1 + $0x60] sm:$0xff]   ;;  %569 = vmatprep.mubr.msk.bf16.mxu1 %vm709_vm0, %v708_v0  ;;  %s468_s17 = sshll.u32 %s710_s16, 4  ;;  %s469_s17 = int_to_ptr.vmem [resolvable:$true] %s468_s17 }
  0x29   :  { %515 = vmatprep.subr.bf16.mxu0 %v602_v3  ;;  %v607_v8 = vld [vmem:[%s869_s1 + $0x18] sm:$0xff]   ;;  %v609_v10 = vld [vmem:[%s869_s1 + $0x20] sm:$0xff]   ;;  %v610_v11 = vld [vmem:[%s869_s1 + $0x68] sm:$0xff]   ;;  %p681_p3 = scmp.lt.s32.totalorder %s469_s17, %s469_s17 }
  0x2a   :  { %v57_v12 = vld [vmem:[%s868_s0 + $0x8] sm:$0xff]  ;;  %v616_v14 = vld [vmem:[#allocation2] sm:$0xff]   ;;  %v612_v16 = vld [vmem:[%s869_s1 + $0x70] sm:$0xff]  }
  0x2b   :  { %v59_v13 = vpack.c.bf16 %v57_v12, %v57_v12  ;;  %v611_v15 = vld [vmem:[%s869_s1 + $0x28] sm:$0xff]   ;;  %554 = vmatpush3.bf16.msra.mxu1 %v616_v14  ;;  %v613_v18 = vld [vmem:[%s869_s1 + $0x30] sm:$0xff]   ;;  %v614_v19 = vld [vmem:[%s869_s1 + $0x78] sm:$0xff]  }
  0x2c   :  { %516 = vmatpush3.bf16.msra.mxu0 %v603_v4  ;;  %v617_v17 = vld [vmem:[#allocation2 + $0x8] sm:$0xff]   ;;  %555 = vmatprep.subr.bf16.mxu1 %v708_v0  ;;  %v618_v20 = vld [vmem:[#allocation2 + $0x10] sm:$0xff]   ;;  %v615_v21 = vld [vmem:[%s869_s1 + $0x38] sm:$0xff]  }
  0x2d   :  { %517 = vmatprep.subr.bf16.mxu0 %v604_v5  ;;  %227 = vmatprep.mubr.bf16.mxu0 %v59_v13  ;;  %v56_v22 = vld [vmem:[%s868_s0] sm:$0xff]  ;;  %v619_v23 = vld [vmem:[#allocation2 + $0x18] sm:$0xff]   ;;  %v621_v26 = vld [vmem:[#allocation2 + $0x28] sm:$0xff]  }
  0x2e   :  { %v58_v24 = vpack.c.bf16 %v56_v22, %v56_v22  ;;  %v620_v25 = vld [vmem:[#allocation2 + $0x20] sm:$0xff]   ;;  %v622_v27 = vld [vmem:[#allocation2 + $0x30] sm:$0xff]   ;;  %v623_v28 = vld [vmem:[#allocation2 + $0x38] sm:$0xff]  }
  0x2f   :  { %556 = vmatpush3.bf16.msra.mxu1 %v617_v17  ;;  %v624_v29 = vld [vmem:[#allocation5] sm:$0xff]   ;;  %v625_v30 = vld [vmem:[#allocation5 + $0x8] sm:$0xff]   ;;  %v626_v31 = vld [vmem:[#allocation5 + $0x10] sm:$0xff]  }
  0x30   :  { %518 = vmatpush3.bf16.msra.mxu0 %v605_v6  ;;  %557 = vmatprep.subr.bf16.mxu1 %v708_v0  ;;  %v627_v32 = vld [vmem:[#allocation5 + $0x18] sm:$0xff]   ;;  %v628_v33 = vld [vmem:[#allocation5 + $0x20] sm:$0xff]   ;;  %v629_v34 = vld [vmem:[#allocation5 + $0x28] sm:$0xff]  }
  0x31   :  { %519 = vmatprep.subr.bf16.mxu0 %v606_v7  ;;  %v478_v36 = vld [vmem:[%s870_s2] ss:$0 sm:$0xff]  ;;  %v630_v44 = vld [vmem:[#allocation5 + $0x30] sm:$0xff]   ;;  %v631_v45 = vld [vmem:[#allocation5 + $0x38] sm:$0xff]  }
  0x32   :  { %v495_v46 = vld [vmem:[%s872_s4] ss:$0 sm:$0xff]  ;;  %s676_s4 = scalar_lea.vmem %s469_s17, 128 }
  0x33   :  { %558 = vmatpush3.bf16.msra.mxu1 %v618_v20  ;;  %v504_v54 = vld [vmem:[%s874_s6] ss:$0 sm:$0xff]  ;;  %p677_p2 = scmp.ne.s32.totalorder %s469_s17, %s676_s4  ;;  %p682_p4 = scmp.lt.s32.totalorder %s676_s4, %s676_s4 }
  0x34   :  { %520 = vmatpush3.bf16.msra.mxu0 %v607_v8  ;;  %559 = vmatprep.subr.bf16.mxu1 %v708_v0 }
  0x35   :  { %521 = vmatprep.subr.bf16.mxu0 %v608_v9  ;;  %p683_p5 = por %p682_p4, %p681_p3 }
  0x37   :  { %560 = vmatpush3.bf16.msra.mxu1 %v619_v23  ;;  %p684_p6 = pnand %p683_p5, %p677_p2 }
  0x38   :  { %522 = vmatpush3.bf16.msra.mxu0 %v609_v10  ;;  %561 = vmatprep.subr.bf16.mxu1 %v708_v0 }
  0x39   :  { %523 = vmatprep.subr.bf16.mxu0 %v610_v11 }
  0x3b   :  { %562 = vmatpush3.bf16.msra.mxu1 %v620_v25 }
  0x3c   :  { %524 = vmatpush3.bf16.msra.mxu0 %v611_v15  ;;  %563 = vmatprep.subr.bf16.mxu1 %v708_v0 }
  0x3d   :  { %525 = vmatprep.subr.bf16.mxu0 %v612_v16 }
  0x3f   :  { %564 = vmatpush3.bf16.msra.mxu1 %v621_v26 }
  0x40   :  { %526 = vmatpush3.bf16.msra.mxu0 %v613_v18  ;;  %565 = vmatprep.subr.bf16.mxu1 %v708_v0 }
  0x41   :  { %527 = vmatprep.subr.bf16.mxu0 %v614_v19 }
  0x43   :  { %566 = vmatpush3.bf16.msra.mxu1 %v622_v27 }
  0x44   :  { %528 = vmatpush3.bf16.msra.mxu0 %v615_v21  ;;  %567 = vmatprep.subr.bf16.mxu1 %v708_v0 }
  0x45   :  { %573 = vmatprep.subr.bf16.mxu0 %v708_v0 }
  0x47   :  { %228 = vmatmul.mubr.bf16.vlgmr.msra.gmra.mrb[0].mxu0 %v58_v24  ;;  %568 = vmatpush3.bf16.msra.mxu1 %v623_v28 }
  0x48   :  { %589 = vmatprep.mubr.msk.bf16.mxu0 %vm709_vm0, %v708_v0  ;;  %574 = vmatpush3.bf16.msra.mxu0 %v624_v29 }
  0x49   :  { %575 = vmatprep.subr.bf16.mxu0 %v708_v0 }
  0x4c   :  { %576 = vmatpush3.bf16.msra.mxu0 %v625_v30 }
  0x4d   :  { %577 = vmatprep.subr.bf16.mxu0 %v708_v0 }
  0x50   :  { %578 = vmatpush3.bf16.msra.mxu0 %v626_v31 }
  0x51   :  { %579 = vmatprep.subr.bf16.mxu0 %v708_v0 }
  0x54   :  { %580 = vmatpush3.bf16.msra.mxu0 %v627_v32 }
  0x55   :  { %581 = vmatprep.subr.bf16.mxu0 %v708_v0 }
  0x58   :  { %582 = vmatpush3.bf16.msra.mxu0 %v628_v33 }
  0x59   :  { %583 = vmatprep.subr.bf16.mxu0 %v708_v0 }
  0x5c   :  { %584 = vmatpush3.bf16.msra.mxu0 %v629_v34 }
  0x5d   :  { %585 = vmatprep.subr.bf16.mxu0 %v708_v0 }
  0x60   :  { %586 = vmatpush3.bf16.msra.mxu0 %v630_v44 }
  0x61   :  { %587 = vmatprep.subr.bf16.mxu0 %v708_v0 }
  0x64   :  { %588 = vmatpush3.bf16.msra.mxu0 %v631_v45 }
 0x11a   :  { %v529_v35 = vpop.f32.mrb[0].mxu0 }
 0x11b   :  { %v530_v37 = vpop.f32.mrb[1].mxu0 }
 0x11c   :  { %v531_v38 = vadd.f32 %v530_v37, %v529_v35  ;;  %v532_v39 = vpop.f32.mrb[2].mxu0 }
 0x11d   :  { %v533_v40 = vpop.f32.mrb[3].mxu0 }
 0x11e   :  { %v230_v41 = vadd.f32 %v531_v38, %v478_v36 }
 0x120   :  { %v235_v42 = vmax.f32 %v230_v41, 0.0 }
 0x122   :  { %v236_v43 = vpack.c.bf16 %v235_v42, %v235_v42 }
 0x124   :  { %570 = vmatmul.mubr.bf16.vlgmr.msra.gmra.mrb[0].mxu1 %v236_v43 }
 0x1f7   :  { %v342_v47 = vpop.f32.mrb[0].mxu1 }
 0x1f8   :  { %v343_v48 = vadd.f32 %v495_v46, %v342_v47  ;;  %v571_v49 = vpop.f32.mrb[1].mxu1 }
 0x1f9   :  { %v345_v50 = vpop.f32.mrb[2].mxu1 }
 0x1fa   :  { %v348_v51 = vmax.f32 %v343_v48, 0.0  ;;  %v572_v52 = vpop.f32.mrb[3].mxu1 }
 0x1fc   :  { %v349_v53 = vpack.c.bf16 %v348_v51, %v348_v51 }
 0x1fe   :  { %590 = vmatmul.mubr.bf16.vlgmr.msra.gmra.mrb[4].mxu0 %v349_v53 }
 0x2d1   :  { %v455_v55 = vpop.f32.mrb[4].mxu0 }
 0x2d2   :  { %v456_v56 = vadd.f32 %v504_v54, %v455_v55  ;;  %v591_v57 = vpop.f32.mrb[5].mxu0 }
 0x2d3   :  { %v458_v58 = vpop.f32.mrb[6].mxu0 }
 0x2d4   :  { %461 = vst [vmem:[#allocation7] sm:$0xff] %v456_v56  ;;  %v592_v59 = vpop.f32.mrb[7].mxu0 }
 0x2d5   :  { %687 = shalt.err (!%p684_p6)
}
 0x2d6   :  { %s688_s6 = scalar_lea.hbm %s875_s7, 128 }
 0x2d7   :  { %p689_p7 = scmp.ne.s32.totalorder %s875_s7, %s688_s6  ;;  %p692_p8 = scmp.lt.u32.totalorder %s688_s6, %s875_s7 }
 0x2d9   :  { %p694_p9 = pnand %p692_p8, %p689_p7 }
 0x2db   :  { %697 = shalt.err (!%p694_p9)
}
 0x2dc   :  { %471 = dma.vmem_to_hbm [thread:$0]  %s469_s17, 128, %s875_s7, [#allocation4]  }
 0x2dd   :  { %702 = dma.done.wait [#allocation4], 128  }
 0x2de   :  { %703 = vsyncadd [#allocation4], 4294967168 }
 0x2df   :  { %475 = vsyncpa [#allocation3], 1 }
 0x2e0   :  { %476 = vsyncpa [#allocation6], 1 }
 0x2e1   :  { %477 = vsyncpa [#allocation4], 1 }

</bundles_post_ra>
